<compile_context>
chip_gen: v6e
topology: v6e:2x2x1
jax: 0.10.0
libtpu: 0.0.40
codegen_flags: <defaults>
</compile_context>

<pallas_src>
import math
import functools

import jax
import jax.numpy as jnp
from jax.experimental import pallas as pl
from jax.experimental.pallas import tpu as pltpu


NEG_INF = -1e30                       # finite mask value (avoids NaN in tiled softmax)
VMEM_LIMIT = 32 * 1024 * 1024         # fits v5e/v6e/v7x scoped VMEM comfortably


def _tile(dim, target):
    """Largest safe tile: `target` if it divides `dim`, else the full dim."""
    if dim <= target or dim % target != 0:
        return dim
    return target


# ----------------------------------------------------------------------------
# Tiled, pipelined linear (no bias):  y = x @ w     x:(M,K)  w:(K,N)  y:(M,N)
# Weights are expected pre-transposed to (K, N) once at load time.
# ----------------------------------------------------------------------------
def _matmul_kernel(x_ref, w_ref, o_ref, acc_ref):
    @pl.when(pl.program_id(2) == 0)
    def _():
        acc_ref[...] = jnp.zeros_like(acc_ref)

    acc_ref[...] += jnp.dot(x_ref[...], w_ref[...],
                            preferred_element_type=jnp.float32)

    @pl.when(pl.program_id(2) == pl.num_programs(2) - 1)
    def _():
        o_ref[...] = acc_ref[...].astype(o_ref.dtype)


def linear(x, w, *, tm=512, tn=512, tk=1024):
    M, K = x.shape
    K2, N = w.shape
    assert K == K2
    tm, tn, tk = _tile(M, tm), _tile(N, tn), _tile(K, tk)
    grid = (M // tm, N // tn, K // tk)
    return pl.pallas_call(
        _matmul_kernel,
        out_shape=jax.ShapeDtypeStruct((M, N), x.dtype),
        grid=grid,
        in_specs=[
            pl.BlockSpec((tm, tk), lambda i, j, k: (i, k)),
            pl.BlockSpec((tk, tn), lambda i, j, k: (k, j)),
        ],
        out_specs=pl.BlockSpec((tm, tn), lambda i, j, k: (i, j)),
        scratch_shapes=[pltpu.VMEM((tm, tn), jnp.float32)],
        compiler_params=pltpu.CompilerParams(
            dimension_semantics=("parallel", "parallel", "arbitrary"),
            vmem_limit_bytes=VMEM_LIMIT,
        ),
    )(x, w)


# ----------------------------------------------------------------------------
# Flash-style causal attention with GQA grouping.
#   q: (B, H_kv, n_rep, S, Dh)    k, v: (B, H_kv, S, Dh)
# One grid step = one (batch, kv-group, q-tile, kv-tile); all n_rep query
# heads of the group share the K/V tile (fetched once per group).
# ----------------------------------------------------------------------------
def _flash_kernel(q_ref, k_ref, v_ref, o_ref, m_sc, l_sc, acc_sc, *,
                  scale, tq, tk):
    qi = pl.program_id(2)
    ki = pl.program_id(3)
    n_rep, _, dh = q_ref.shape

    @pl.when(ki == 0)
    def _():
        m_sc[...] = jnp.full_like(m_sc, NEG_INF)
        l_sc[...] = jnp.zeros_like(l_sc)
        acc_sc[...] = jnp.zeros_like(acc_sc)

    q_start = qi * tq
    k_start = ki * tk

    # Skip kv tiles that lie entirely above the causal diagonal.
    @pl.when(k_start <= q_start + tq - 1)
    def _():
        q = q_ref[...].reshape(n_rep * tq, dh)       # all heads of the group
        k = k_ref[...]
        # q @ k^T via dot_general contracting the last axes (no transpose).
        s = jax.lax.dot_general(
            q, k, (((1,), (1,)), ((), ())),
            preferred_element_type=jnp.float32) * scale          # (n_rep*tq, tk)

        # causal mask with a finite value (NaN-safe in tiled online softmax)
        row_in_tile = jax.lax.broadcasted_iota(
            jnp.int32, (n_rep, tq, tk), 1).reshape(n_rep * tq, tk)
        col = k_start + jax.lax.broadcasted_iota(
            jnp.int32, (n_rep * tq, tk), 1)
        s = jnp.where(col <= q_start + row_in_tile, s, NEG_INF)

        m_prev = m_sc[...]
        m_new = jnp.maximum(m_prev, jnp.max(s, axis=-1, keepdims=True))
        alpha = jnp.exp(m_prev - m_new)
        p = jnp.exp(s - m_new)
        l_sc[...] = alpha * l_sc[...] + jnp.sum(p, axis=-1, keepdims=True)
        acc_sc[...] = alpha * acc_sc[...] + jax.lax.dot_general(
            p.astype(v_ref.dtype), v_ref[...], (((1,), (0,)), ((), ())),
            preferred_element_type=jnp.float32)
        m_sc[...] = m_new

    @pl.when(ki == pl.num_programs(3) - 1)
    def _():
        inv_l = pl.reciprocal(l_sc[...], approx=True)
        out = (acc_sc[...] * inv_l).reshape(n_rep, tq, dh)
        # TODO(synk): a lane-dense (tq, n_rep*Dh) output slab would avoid
        #             masked partial stores when Dh < 128 (needs in-kernel
        #             transpose); kept per-head layout for simplicity.
        o_ref[...] = out.astype(o_ref.dtype)


def flash_attention(q, k, v, *, tq=128, tk=256):
    B, Hkv, n_rep, S, Dh = q.shape
    tq, tk = _tile(S, tq), _tile(S, tk)
    scale = 1.0 / math.sqrt(Dh)
    kernel = functools.partial(_flash_kernel, scale=scale, tq=tq, tk=tk)
    grid = (B, Hkv, S // tq, S // tk)
    return pl.pallas_call(
        kernel,
        out_shape=jax.ShapeDtypeStruct(q.shape, q.dtype),
        grid=grid,
        in_specs=[
            pl.BlockSpec((None, None, n_rep, tq, Dh),
                         lambda b, g, qi, ki: (b, g, 0, qi, 0)),
            pl.BlockSpec((None, None, tk, Dh),
                         lambda b, g, qi, ki: (b, g, ki, 0)),
            pl.BlockSpec((None, None, tk, Dh),
                         lambda b, g, qi, ki: (b, g, ki, 0)),
        ],
        out_specs=pl.BlockSpec((None, None, n_rep, tq, Dh),
                               lambda b, g, qi, ki: (b, g, 0, qi, 0)),
        scratch_shapes=[
            pltpu.VMEM((n_rep * tq, 1), jnp.float32),    # running max
            pltpu.VMEM((n_rep * tq, 1), jnp.float32),    # running sum
            pltpu.VMEM((n_rep * tq, Dh), jnp.float32),   # output accumulator
        ],
        compiler_params=pltpu.CompilerParams(
            dimension_semantics=("parallel", "parallel", "parallel", "arbitrary"),
            vmem_limit_bytes=VMEM_LIMIT,
        ),
    )(q, k, v)


# ----------------------------------------------------------------------------
# Rotary embedding (interleaved-pair convention, matches torch.view_as_complex
# of reshape(..., -1, 2)).
# ----------------------------------------------------------------------------
def apply_rope(x, cos, sin):
    # x: (B, S, H, Dh), cos/sin: (S, Dh//2)
    B, S, H, Dh = x.shape
    xf = x.astype(jnp.float32).reshape(B, S, H, Dh // 2, 2)
    xr, xi = xf[..., 0], xf[..., 1]
    c = cos[None, :, None, :]
    s = sin[None, :, None, :]
    out = jnp.stack([xr * c - xi * s, xr * s + xi * c], axis=-1)
    return out.reshape(B, S, H, Dh).astype(x.dtype)


# ----------------------------------------------------------------------------
# Full forward pass (mirrors Attention.forward with past_key_value=None,
# use_cache=False, eval mode).
# ----------------------------------------------------------------------------
def attention_forward(x, cos, sin, w_qkv_t, wo_t, n_heads, n_kv_heads):
    B, S, D = x.shape
    Dh = D // n_heads
    n_rep = n_heads // n_kv_heads
    q_dim = n_heads * Dh
    kv_dim = n_kv_heads * Dh

    xf = x.reshape(B * S, D)

    # Fused QKV projection: x is read from HBM once.
    qkv = linear(xf, w_qkv_t)                                # (B*S, q_dim+2*kv_dim)
    xq = qkv[:, :q_dim].reshape(B, S, n_heads, Dh)
    xk = qkv[:, q_dim:q_dim + kv_dim].reshape(B, S, n_kv_heads, Dh)
    xv = qkv[:, q_dim + kv_dim:].reshape(B, S, n_kv_heads, Dh)

    # TODO(synk): RoPE is still a separate XLA elementwise pass; fusing it into
    #             the attention kernel prologue would save one HBM round trip.
    xq = apply_rope(xq, cos, sin)
    xk = apply_rope(xk, cos, sin)

    # GQA group layout: q -> (B, H_kv, n_rep, S, Dh); k/v -> (B, H_kv, S, Dh)
    xq = xq.reshape(B, S, n_kv_heads, n_rep, Dh).transpose(0, 2, 3, 1, 4)
    xk = xk.transpose(0, 2, 1, 3)
    xv = xv.transpose(0, 2, 1, 3)

    o = flash_attention(xq, xk, xv)                          # (B, H_kv, n_rep, S, Dh)

    # back to (B*S, H*Dh); (group, rep) flattening matches repeat_interleave order
    o = o.transpose(0, 3, 1, 2, 4).reshape(B * S, n_heads * Dh)
    out = linear(o, wo_t).reshape(B, S, D)
    # TODO(synk): attn_dropout / resid_dropout are identity in eval mode;
    #             KV-cache path (past_key_value / use_cache) not implemented.
    return out


# ----------------------------------------------------------------------------
# Pure-JAX reference (mirrors the PyTorch module) for validation.
# ----------------------------------------------------------------------------
def reference_forward(x, cos, sin, wq, wk, wv, wo, n_heads, n_kv_heads):
    B, S, D = x.shape
    Dh = D // n_heads
    n_rep = n_heads // n_kv_heads
    xq = (x @ wq.T).reshape(B, S, n_heads, Dh)
    xk = (x @ wk.T).reshape(B, S, n_kv_heads, Dh)
    xv = (x @ wv.T).reshape(B, S, n_kv_heads, Dh)
    xq = apply_rope(xq, cos, sin)
    xk = apply_rope(xk, cos, sin)
    xk = jnp.repeat(xk, n_rep, axis=2)
    xv = jnp.repeat(xv, n_rep, axis=2)
    q = xq.transpose(0, 2, 1, 3)
    k = xk.transpose(0, 2, 1, 3)
    v = xv.transpose(0, 2, 1, 3)
    s = (q @ jnp.swapaxes(k, -1, -2)) / math.sqrt(Dh)
    mask = jnp.triu(jnp.full((S, S), -jnp.inf, dtype=jnp.float32), k=1)
    s = s + mask[None, None]
    p = jax.nn.softmax(s.astype(jnp.float32), axis=-1).astype(q.dtype)
    o = (p @ v).transpose(0, 2, 1, 3).reshape(B, S, -1)
    return o @ wo.T


if __name__ == "__main__":
    # Small config: dim=32, n_heads=4, n_kv_heads=2 (GQA n_rep=2), seq=8, batch=2
    B, S, D, H, HKV = 2, 8, 32, 4, 2
    Dh = D // H

    key = jax.random.PRNGKey(0)
    kx, kq, kk, kv, ko = jax.random.split(key, 5)
    x = jax.random.normal(kx, (B, S, D), dtype=jnp.float32)
    # PyTorch nn.Linear layout (out_features, in_features)
    wq = 0.05 * jax.random.normal(kq, (H * Dh, D), dtype=jnp.float32)
    wk = 0.05 * jax.random.normal(kk, (HKV * Dh, D), dtype=jnp.float32)
    wv = 0.05 * jax.random.normal(kv, (HKV * Dh, D), dtype=jnp.float32)
    wo = 0.05 * jax.random.normal(ko, (D, H * Dh), dtype=jnp.float32)

    # "Load-time" weight prep: fuse QKV and pre-transpose once (no per-call .T).
    w_qkv_t = jnp.concatenate([wq, wk, wv], axis=0).T        # (D, (H+2*HKV)*Dh)
    wo_t = wo.T                                              # (H*Dh, D)

    # pos_cis equivalent (precompute_pos_cis): cos/sin of t * freqs
    theta = 1e6
    freqs = 1.0 / (theta ** (jnp.arange(0, Dh, 2, dtype=jnp.float32) / Dh))
    t = jnp.arange(S, dtype=jnp.float32)
    ang = jnp.outer(t, freqs)                                # (S, Dh//2)
    cos, sin = jnp.cos(ang), jnp.sin(ang)

    out = attention_forward(x, cos, sin, w_qkv_t, wo_t, H, HKV)
    jax.block_until_ready(out)
    assert out.shape == (B, S, D)

    ref = reference_forward(x, cos, sin, wq, wk, wv, wo, H, HKV)
    err = float(jnp.max(jnp.abs(out - ref)))
    assert err < 1e-2, f"max abs error too large: {err}"

    print("KERNEL_OK")
</pallas_src>

<mosaic_0001>
module attributes {stable_mosaic.version = 11 : i64} {
  func.func @_matmul_kernel(%arg0: i32, %arg1: i32, %arg2: i32, %arg3: memref<16x32xf32, #tpu.memory_space<vmem>>, %arg4: memref<32x64xf32, #tpu.memory_space<vmem>>, %arg5: memref<16x64xf32, #tpu.memory_space<vmem>>, %arg6: memref<16x64xf32, #tpu.memory_space<vmem>>) attributes {dimension_semantics = [#tpu.dimension_semantics<parallel>, #tpu.dimension_semantics<parallel>, #tpu.dimension_semantics<arbitrary>], iteration_bounds = array<i64: 1, 1, 1>, scalar_prefetch = 0 : i64, scratch_operands = 1 : i64, tpu.core_type = #tpu.core_type<tc>, window_params = [{transform_indices = @transform_0, window_bounds = array<i64: 16, 32>}, {transform_indices = @transform_1, window_bounds = array<i64: 32, 64>}, {transform_indices = @transform_2, window_bounds = array<i64: 16, 64>}]} {
    %c0_i32 = arith.constant 0 : i32
    %0 = arith.cmpi eq, %arg2, %c0_i32 : i32
    %1 = arith.extui %0 : i1 to i32
    %c0_i32_0 = arith.constant 0 : i32
    %2 = arith.cmpi ne, %1, %c0_i32_0 : i32
    scf.if %2 {
      %cst_10 = arith.constant 0.000000e+00 : f32
      %12 = vector.broadcast %cst_10 : f32 to vector<16x64xf32>
      %c0_11 = arith.constant 0 : index
      %c0_12 = arith.constant 0 : index
      %13 = vector.load %arg6[%c0_11, %c0_12] : memref<16x64xf32, #tpu.memory_space<vmem>>, vector<16x64xf32>
      tpu.vector_store %arg6[%c0_11, %c0_12], %12 {strides = array<i32>} : memref<16x64xf32, #tpu.memory_space<vmem>>, vector<16x64xf32>,
    } else {
    }
    %c0 = arith.constant 0 : index
    %c0_1 = arith.constant 0 : index
    %3 = vector.load %arg6[%c0, %c0_1] : memref<16x64xf32, #tpu.memory_space<vmem>>, vector<16x64xf32>
    %c0_2 = arith.constant 0 : index
    %c0_3 = arith.constant 0 : index
    %4 = vector.load %arg3[%c0_2, %c0_3] : memref<16x32xf32, #tpu.memory_space<vmem>>, vector<16x32xf32>
    %c0_4 = arith.constant 0 : index
    %c0_5 = arith.constant 0 : index
    %5 = vector.load %arg4[%c0_4, %c0_5] : memref<32x64xf32, #tpu.memory_space<vmem>>, vector<32x64xf32>
    %cst = arith.constant dense<0.000000e+00> : vector<16x64xf32>
    %6 = tpu.matmul %4, %5, %cst {dimension_numbers = #tpu.dot_dimension_numbers<[1], [0], [0], [1], [0, 0, 1, 1], [], []>} : vector<16x32xf32>, vector<32x64xf32>, vector<16x64xf32> -> vector<16x64xf32>
    %7 = arith.addf %3, %6 : vector<16x64xf32>
    %c0_6 = arith.constant 0 : index
    %c0_7 = arith.constant 0 : index
    %8 = vector.load %arg6[%c0_6, %c0_7] : memref<16x64xf32, #tpu.memory_space<vmem>>, vector<16x64xf32>
    tpu.vector_store %arg6[%c0_6, %c0_7], %7 {strides = array<i32>} : memref<16x64xf32, #tpu.memory_space<vmem>>, vector<16x64xf32>,
    %c0_i32_8 = arith.constant 0 : i32
    %9 = arith.cmpi eq, %arg2, %c0_i32_8 : i32
    %10 = arith.extui %9 : i1 to i32
    %c0_i32_9 = arith.constant 0 : i32
    %11 = arith.cmpi ne, %10, %c0_i32_9 : i32
    scf.if %11 {
      %c0_10 = arith.constant 0 : index
      %c0_11 = arith.constant 0 : index
      %12 = vector.load %arg6[%c0_10, %c0_11] : memref<16x64xf32, #tpu.memory_space<vmem>>, vector<16x64xf32>
      %c0_12 = arith.constant 0 : index
      %c0_13 = arith.constant 0 : index
      %13 = vector.load %arg5[%c0_12, %c0_13] : memref<16x64xf32, #tpu.memory_space<vmem>>, vector<16x64xf32>
      tpu.vector_store %arg5[%c0_12, %c0_13], %12 {strides = array<i32>} : memref<16x64xf32, #tpu.memory_space<vmem>>, vector<16x64xf32>,
    } else {
    }
    return
  }
  func.func @transform_0(%arg0: i32, %arg1: i32, %arg2: i32) -> (i32, i32) {
    %c0_i32 = arith.constant 0 : i32
    return %arg0, %arg2 : i32, i32
  }
  func.func @transform_1(%arg0: i32, %arg1: i32, %arg2: i32) -> (i32, i32) {
    %c0_i32 = arith.constant 0 : i32
    return %arg2, %arg1 : i32, i32
  }
  func.func @transform_2(%arg0: i32, %arg1: i32, %arg2: i32) -> (i32, i32) {
    %c0_i32 = arith.constant 0 : i32
    return %arg0, %arg1 : i32, i32
  }
}

</mosaic_0001>

<bundles_post_ra>
// kernel: tpu_custom_call.1
= control target key start
LH: loop header
LB: loop body
LE: loop exit
PB: predicated region body
PF: predicated region fallthrough
CT: control target
= control target key end

     0   :  { %7 = vsyncpa [#allocation4], 0  ;;  %s305_s0 = inlined_call_operand.hbm [shape: f32[16,32], index: 0, kind: input, shape index: {}]   ;;  %s306_s1 = inlined_call_operand.hbm [shape: f32[32,64], index: 1, kind: input, shape index: {}]   ;;  %s307_s2 = inlined_call_operand.hbm [shape: f32[16,64], index: 2, kind: output, shape index: {}]  }
   0x1   :  { %8 = vsyncpa [#allocation7], 0 }
   0x2   :  { %9 = vsyncpa [#allocation5], 0  ;;  %s258_s9 = smov [#allocation3]  }
   0x3   :  { %s15_s10 = sshll.u32 %s258_s9, 4  ;;  %s16_s10 = int_to_ptr.vmem [resolvable:$true] %s15_s10 }
   0x4   :  { %s200_s11 = scalar_lea.vmem %s16_s10, 256  ;;  %p205_p1 = scmp.lt.s32.totalorder %s16_s10, %s16_s10 }
   0x5   :  { %p201_p0 = scmp.ne.s32.totalorder %s16_s10, %s200_s11  ;;  %p206_p2 = scmp.lt.s32.totalorder %s200_s11, %s200_s11 }
   0x7   :  { %p207_p3 = por %p206_p2, %p205_p1 }
   0x9   :  { %p208_p4 = pnand %p207_p3, %p201_p0 }
   0xb   :  { %211 = shalt.err (!%p208_p4)
}
   0xc   :  { %s259_s12 = smov 128   ;;  %s260_s13 = smov 8  }
   0xd   :  { %21 = dma.hbm_to_vmem [thread:$0]  %s305_s0, 256, %s16_s10, [#allocation4], %s259_s12, %s259_s12, %s260_s13  }
   0xe   :  { %s261_s16 = smov [#allocation6]  }
   0xf   :  { %s27_s17 = sshll.u32 %s261_s16, 4  ;;  %s28_s17 = int_to_ptr.vmem [resolvable:$true] %s27_s17 }
  0x10   :  { %s220_s18 = scalar_lea.vmem %s28_s17, 512  ;;  %p225_p6 = scmp.lt.s32.totalorder %s28_s17, %s28_s17 }
  0x11   :  { %p221_p5 = scmp.ne.s32.totalorder %s28_s17, %s220_s18  ;;  %p226_p7 = scmp.lt.s32.totalorder %s220_s18, %s220_s18 }
  0x13   :  { %p227_p8 = por %p226_p7, %p225_p6 }
  0x15   :  { %p228_p9 = pnand %p227_p8, %p221_p5 }
  0x17   :  { %231 = shalt.err (!%p228_p9)
}
  0x18   :  { %33 = dma.hbm_to_vmem [thread:$0]  %s306_s1, 512, %s28_s17, [#allocation7], %s259_s12, %s259_s12, %s260_s13  }
  0x19   :  { %252 = dma.done.wait [#allocation4], 256  }
  0x1a   :  { %253 = vsyncadd [#allocation4], 4294967040 }
  0x1b   :  { %254 = dma.done.wait [#allocation7], 512  }
  0x1c   :  { %255 = vsyncadd [#allocation7], 4294966784  ;;  %vm44_vm0 = vcmask 523264   ;;  %v262_v0 = vmov 0.0   ;;  %vm55_vm1 = vcmask 261120   ;;  %v54_v1 = vld [vmem:[#allocation6 + $0x18] sm:$0xff] }
  0x1d   :  { %46 = vst.msk [vmem:[#allocation2 + $0x8] sm:$0xff] %vm44_vm0, %v262_v0  ;;  %45 = vst.msk [vmem:[#allocation2] sm:$0xff] %vm44_vm0, %v262_v0  ;;  %v53_v2 = vld [vmem:[#allocation6 + $0x10] sm:$0xff]  ;;  %175 = vmatprep.subr.mxu0 %v54_v1  ;;  %v52_v4 = vld [vmem:[#allocation6 + $0x8] sm:$0xff]  ;;  %s263_s0 = smov [#allocation8]  }
  0x1e   :  { %v49_v3 = vld [vmem:[#allocation3] sm:$0xff]  ;;  %176 = vmatpush3.msra.mxu0 %v54_v1  ;;  %v51_v5 = vld [vmem:[#allocation6] sm:$0xff]  ;;  %v50_v6 = vld [vmem:[#allocation3 + $0x8] sm:$0xff]  ;;  %s154_s1 = sshll.u32 %s263_s0, 4  ;;  %s155_s1 = int_to_ptr.vmem [resolvable:$true] %s154_s1 }
  0x1f   :  { %183 = vmatprep.mubr.msk.f32.mxu0 %vm55_vm1, %v49_v3  ;;  %177 = vmatprep.subr.mxu0 %v53_v2  ;;  %s232_s21 = scalar_lea.vmem %s155_s1, 256  ;;  %p237_p11 = scmp.lt.s32.totalorder %s155_s1, %s155_s1 }
  0x20   :  { %178 = vmatpush3.msra.mxu0 %v53_v2  ;;  %p233_p10 = scmp.ne.s32.totalorder %s155_s1, %s232_s21  ;;  %p238_p12 = scmp.lt.s32.totalorder %s232_s21, %s232_s21 }
  0x21   :  { %179 = vmatprep.subr.mxu0 %v52_v4 }
  0x22   :  { %180 = vmatpush3.msra.mxu0 %v52_v4  ;;  %p239_p13 = por %p238_p12, %p237_p11 }
  0x23   :  { %181 = vmatprep.subr.mxu0 %v51_v5 }
  0x24   :  { %182 = vmatpush3.msra.mxu0 %v51_v5  ;;  %v48_v7 = vld [vmem:[#allocation2 + $0x8] sm:$0xff]  ;;  %v47_v9 = vld [vmem:[#allocation2] sm:$0xff]  ;;  %p240_p0 = pnand %p239_p13, %p233_p10 }
  0x25   :  { %184 = vmatmul.mubr.msk.f32.vlgmr.msra.gmra.mxu0 %vm55_vm1, %v50_v6 }
  0xe5   :  { %v185_v8 = vpop.f32.mrf.mxu0 }
  0xe6   :  { %v138_v10 = vadd.f32 %v185_v8, %v48_v7 }
  0xe7   :  { %v128_v11 = vpop.f32.mrf.mxu0 }
  0xe8   :  { %141 = vst.msk [vmem:[#allocation2 + $0x8] sm:$0xff] %vm44_vm0, %v138_v10  ;;  %v137_v12 = vadd.f32 %v128_v11, %v47_v9 }
  0xea   :  { %140 = vst.msk [vmem:[#allocation2] sm:$0xff] %vm44_vm0, %v137_v12 }
  0xef   :  { %v146_v13 = vld [vmem:[#allocation2 + $0x8] sm:$0xff] }
  0xf0   :  { %148 = vst.msk [vmem:[#allocation8 + $0x8] sm:$0xff] %vm44_vm0, %v146_v13 }
  0xf1   :  { %v145_v14 = vld [vmem:[#allocation2] sm:$0xff] }
  0xf2   :  { %147 = vst.msk [vmem:[#allocation8] sm:$0xff] %vm44_vm0, %v145_v14 }
  0xf3   :  { %243 = shalt.err (!%p240_p0)
}
  0xf4   :  { %160 = dma.vmem_to_hbm [thread:$0]  %s155_s1, 256, %s307_s2, [#allocation5], %s259_s12, %s259_s12, %s260_s13  }
  0xf5   :  { %256 = dma.done.wait [#allocation5], 256  }
  0xf6   :  { %257 = vsyncadd [#allocation5], 4294967040 }
  0xf7   :  { %164 = vsyncpa [#allocation4], 1 }
  0xf8   :  { %165 = vsyncpa [#allocation7], 1 }
  0xf9   :  { %166 = vsyncpa [#allocation5], 1 }

</bundles_post_ra>
